<compile_context>
chip_gen: v7x
topology: tpu7x:2x2x1
jax: 0.10.0
libtpu: 0.0.40
codegen_flags: <defaults>
</compile_context>

<pallas_src>
import functools

import jax
import jax.numpy as jnp
from jax.experimental import pallas as pl
from jax.experimental.pallas import tpu as pltpu


def _round_up(x, m):
    return (x + m - 1) // m * m


# ----------------------------- fused kernel ----------------------------------


def _graph_layer_kernel(feat_ref, sup_ref, mask_ref,
                        enc_w_ref, enc_b_ref,
                        wa_ref, wx_ref, wh_ref,
                        ba_ref, bx_ref, bh_ref,
                        out_ref, *, gru_step, dp):
    # feat_ref: (1, Np, Din)   sup_ref: (1, Np, Np)   mask_ref: (1, Np, 1)
    # enc_w_ref: (Din, Dp)     enc_b_ref: (1, Dp)
    # wa_ref: (Dp, 3*Dp)  = [Wz0 | Wr0 | Wh0]   (LHS = a = support @ x)
    # wx_ref: (Dp, 2*Dp)  = [Wz1 | Wr1]         (LHS = x)
    # wh_ref: (Dp, Dp)    = Wh1                 (LHS = r * x)
    # ba/bx/bh: matching concatenated biases.
    f = feat_ref[0]
    sup = sup_ref[0]
    m = mask_ref[0]                     # read once, broadcast by VPU as needed

    enc_w = enc_w_ref[...]
    enc_b = enc_b_ref[...]
    wa = wa_ref[...]
    wx = wx_ref[...]
    wh = wh_ref[...]
    ba = ba_ref[...]
    bx = bx_ref[...]
    bh = bh_ref[...]

    # encode: output = mask * tanh(feature @ W_enc + b_enc)
    x = m * jnp.tanh(
        jnp.dot(f, enc_w, preferred_element_type=jnp.float32) + enc_b)

    # gru_step is small and static -> unrolled loop, state stays in vregs/VMEM.
    for _ in range(gru_step):
        a = jnp.dot(sup, x, preferred_element_type=jnp.float32)

        ga = jnp.dot(a, wa, preferred_element_type=jnp.float32) + ba   # (Np, 3*Dp)
        gx = jnp.dot(x, wx, preferred_element_type=jnp.float32) + bx   # (Np, 2*Dp)

        # slices land on 128-lane boundaries (Dp is a multiple of 128)
        z = jax.nn.sigmoid(ga[:, 0:dp] + gx[:, 0:dp])
        r = jax.nn.sigmoid(ga[:, dp:2 * dp] + gx[:, dp:2 * dp])
        h1 = jnp.dot(r * x, wh, preferred_element_type=jnp.float32) + bh
        h = jnp.tanh(m * (ga[:, 2 * dp:3 * dp] + h1))
        x = h * z + x * (1.0 - z)

    out_ref[0] = x


# ----------------------------- wrapper ----------------------------------------


@functools.partial(jax.jit, static_argnames=("gru_step",))
def graph_layer_forward(feature, root, rootindex, support, mask,
                        encode_w, encode_b, gru_w, gru_b, gru_step=2):
    # root / rootindex are unused by the reference forward (x1 = copy(root)
    # is dead code); kept in the signature for fidelity.
    del root, rootindex

    B, N, Din = feature.shape
    Dout = encode_w.shape[1]

    Np = _round_up(N, 8)          # sublane alignment
    Dp = _round_up(Dout, 128)     # lane alignment -> lane-dense stores
    pad_n = Np - N
    pad_d = Dp - Dout

    feat_p = jnp.pad(feature, ((0, 0), (0, pad_n), (0, 0)))
    sup_p = jnp.pad(support, ((0, 0), (0, pad_n), (0, pad_n)))
    mask_p = jnp.pad(mask, ((0, 0), (0, pad_n), (0, 0)))

    enc_w_p = jnp.pad(encode_w, ((0, 0), (0, pad_d)))
    enc_b_p = jnp.pad(encode_b.reshape(1, Dout), ((0, 0), (0, pad_d)))

    # gru_w: (6, Dout, Dout) ordered [z0, z1, r0, r1, h0, h1]; pad each gate.
    w_pad = jnp.pad(gru_w, ((0, 0), (0, pad_d), (0, pad_d)))          # (6, Dp, Dp)
    b_pad = jnp.pad(gru_b.reshape(6, Dout), ((0, 0), (0, pad_d)))     # (6, Dp)

    # merge matmuls that share an LHS
    wa = jnp.concatenate([w_pad[0], w_pad[2], w_pad[4]], axis=1)      # (Dp, 3Dp)
    wx = jnp.concatenate([w_pad[1], w_pad[3]], axis=1)                # (Dp, 2Dp)
    wh = w_pad[5]                                                     # (Dp, Dp)
    ba = jnp.concatenate([b_pad[0], b_pad[2], b_pad[4]])[None, :]     # (1, 3Dp)
    bx = jnp.concatenate([b_pad[1], b_pad[3]])[None, :]               # (1, 2Dp)
    bh = b_pad[5][None, :]                                            # (1, Dp)

    kernel = functools.partial(_graph_layer_kernel, gru_step=gru_step, dp=Dp)

    out_p = pl.pallas_call(
        kernel,
        out_shape=jax.ShapeDtypeStruct((B, Np, Dp), jnp.float32),
        grid=(B,),
        in_specs=[
            pl.BlockSpec((1, Np, Din), lambda i: (i, 0, 0)),
            pl.BlockSpec((1, Np, Np), lambda i: (i, 0, 0)),
            pl.BlockSpec((1, Np, 1), lambda i: (i, 0, 0)),
            pl.BlockSpec((Din, Dp), lambda i: (0, 0)),
            pl.BlockSpec((1, Dp), lambda i: (0, 0)),
            pl.BlockSpec((Dp, 3 * Dp), lambda i: (0, 0)),
            pl.BlockSpec((Dp, 2 * Dp), lambda i: (0, 0)),
            pl.BlockSpec((Dp, Dp), lambda i: (0, 0)),
            pl.BlockSpec((1, 3 * Dp), lambda i: (0, 0)),
            pl.BlockSpec((1, 2 * Dp), lambda i: (0, 0)),
            pl.BlockSpec((1, Dp), lambda i: (0, 0)),
        ],
        out_specs=pl.BlockSpec((1, Np, Dp), lambda i: (i, 0, 0)),
        compiler_params=pltpu.CompilerParams(
            dimension_semantics=("parallel",)),
    )(feat_p, sup_p, mask_p, enc_w_p, enc_b_p, wa, wx, wh, ba, bx, bh)

    # strip lane / sublane padding (padded lanes and padded node rows are 0)
    return out_p[:, :N, :Dout]


# ----------------------------- reference (plain JAX) -------------------------


def _reference_forward(feature, support, mask, encode_w, encode_b, gru_w, gru_b,
                       gru_step):
    out = mask * jnp.tanh(feature @ encode_w + encode_b[0])
    for _ in range(gru_step):
        a = support @ out
        z = jax.nn.sigmoid(a @ gru_w[0] + gru_b[0, 0] + out @ gru_w[1] + gru_b[1, 0])
        r = jax.nn.sigmoid(a @ gru_w[2] + gru_b[2, 0] + out @ gru_w[3] + gru_b[3, 0])
        h = jnp.tanh(mask * (a @ gru_w[4] + gru_b[4, 0] + (r * out) @ gru_w[5] + gru_b[5, 0]))
        out = h * z + out * (1.0 - z)
    return out


# ----------------------------- main -------------------------------------------


if __name__ == "__main__":
    B, N = 2, 8           # batch of graphs, nodes per graph
    Din, Dout = 16, 32    # input_dim, output_dim
    GRU_STEP = 2

    key = jax.random.PRNGKey(0)
    keys = jax.random.split(key, 16)

    def glorot(k, shape):
        lim = (6.0 / (shape[0] + shape[1])) ** 0.5
        return jax.random.uniform(k, shape, jnp.float32, -lim, lim)

    # GraphLayer params
    encode_w = glorot(keys[0], (Din, Dout))
    encode_b = jnp.zeros((1, Dout), jnp.float32)

    # gru_unit params, stacked in order [z0, z1, r0, r1, h0, h1]
    gru_w = jnp.stack([glorot(keys[1 + i], (Dout, Dout)) for i in range(6)])
    gru_b = jnp.zeros((6, 1, Dout), jnp.float32)

    # Inputs
    feature = jax.random.normal(keys[8], (B, N, Din), jnp.float32)
    root = jax.random.normal(keys[9], (B, Dout), jnp.float32)      # unused by forward
    rootindex = jnp.zeros((B,), jnp.int32)                         # unused by forward
    support = jax.random.normal(keys[10], (B, N, N), jnp.float32)  # adjacency-like
    mask = (jax.random.uniform(keys[11], (B, N, 1)) > 0.3).astype(jnp.float32)

    out = graph_layer_forward(feature, root, rootindex, support, mask,
                              encode_w, encode_b, gru_w, gru_b, gru_step=GRU_STEP)
    out = jax.block_until_ready(out)

    ref = _reference_forward(feature, support, mask, encode_w, encode_b,
                             gru_w, gru_b, GRU_STEP)
    assert out.shape == (B, N, Dout)
    assert jnp.allclose(out, ref, atol=1e-4, rtol=1e-4), "mismatch vs reference"

    print("KERNEL_OK")
</pallas_src>

<mosaic_0001>
module attributes {stable_mosaic.version = 11 : i64} {
  func.func @_graph_layer_kernel(%arg0: i32, %arg1: memref<1x8x16xf32, #tpu.memory_space<vmem>>, %arg2: memref<1x8x8xf32, #tpu.memory_space<vmem>>, %arg3: memref<1x8x1xf32, #tpu.memory_space<vmem>>, %arg4: memref<16x128xf32, #tpu.memory_space<vmem>>, %arg5: memref<1x128xf32, #tpu.memory_space<vmem>>, %arg6: memref<128x384xf32, #tpu.memory_space<vmem>>, %arg7: memref<128x256xf32, #tpu.memory_space<vmem>>, %arg8: memref<128x128xf32, #tpu.memory_space<vmem>>, %arg9: memref<1x384xf32, #tpu.memory_space<vmem>>, %arg10: memref<1x256xf32, #tpu.memory_space<vmem>>, %arg11: memref<1x128xf32, #tpu.memory_space<vmem>>, %arg12: memref<1x8x128xf32, #tpu.memory_space<vmem>>) attributes {dimension_semantics = [#tpu.dimension_semantics<parallel>], iteration_bounds = array<i64: 2>, scalar_prefetch = 0 : i64, scratch_operands = 0 : i64, tpu.core_type = #tpu.core_type<tc>, window_params = [{transform_indices = @transform_0, window_bounds = array<i64: 1, 8, 16>}, {transform_indices = @transform_1, window_bounds = array<i64: 1, 8, 8>}, {transform_indices = @transform_2, window_bounds = array<i64: 1, 8, 1>}, {pipeline_mode = #tpu.pipeline_mode<synchronous>, transform_indices = @transform_3, window_bounds = array<i64: 16, 128>}, {pipeline_mode = #tpu.pipeline_mode<synchronous>, transform_indices = @transform_4, window_bounds = array<i64: 1, 128>}, {pipeline_mode = #tpu.pipeline_mode<synchronous>, transform_indices = @transform_5, window_bounds = array<i64: 128, 384>}, {pipeline_mode = #tpu.pipeline_mode<synchronous>, transform_indices = @transform_6, window_bounds = array<i64: 128, 256>}, {pipeline_mode = #tpu.pipeline_mode<synchronous>, transform_indices = @transform_7, window_bounds = array<i64: 128, 128>}, {pipeline_mode = #tpu.pipeline_mode<synchronous>, transform_indices = @transform_8, window_bounds = array<i64: 1, 384>}, {pipeline_mode = #tpu.pipeline_mode<synchronous>, transform_indices = @transform_9, window_bounds = array<i64: 1, 256>}, {pipeline_mode = #tpu.pipeline_mode<synchronous>, transform_indices = @transform_10, window_bounds = array<i64: 1, 128>}, {transform_indices = @transform_11, window_bounds = array<i64: 1, 8, 128>}]} {
    %c0 = arith.constant 0 : index
    %c0_0 = arith.constant 0 : index
    %c0_1 = arith.constant 0 : index
    %0 = vector.load %arg1[%c0, %c0_0, %c0_1] : memref<1x8x16xf32, #tpu.memory_space<vmem>>, vector<1x8x16xf32>
    %1 = vector.shape_cast %0 : vector<1x8x16xf32> to vector<8x16xf32>
    %c0_2 = arith.constant 0 : index
    %c0_3 = arith.constant 0 : index
    %c0_4 = arith.constant 0 : index
    %2 = vector.load %arg2[%c0_2, %c0_3, %c0_4] : memref<1x8x8xf32, #tpu.memory_space<vmem>>, vector<1x8x8xf32>
    %3 = vector.shape_cast %2 : vector<1x8x8xf32> to vector<8x8xf32>
    %c0_5 = arith.constant 0 : index
    %c0_6 = arith.constant 0 : index
    %c0_7 = arith.constant 0 : index
    %4 = vector.load %arg3[%c0_5, %c0_6, %c0_7] : memref<1x8x1xf32, #tpu.memory_space<vmem>>, vector<1x8x1xf32>
    %5 = vector.shape_cast %4 : vector<1x8x1xf32> to vector<8x1xf32>
    %c0_8 = arith.constant 0 : index
    %c0_9 = arith.constant 0 : index
    %6 = vector.load %arg4[%c0_8, %c0_9] : memref<16x128xf32, #tpu.memory_space<vmem>>, vector<16x128xf32>
    %c0_10 = arith.constant 0 : index
    %c0_11 = arith.constant 0 : index
    %7 = vector.load %arg5[%c0_10, %c0_11] : memref<1x128xf32, #tpu.memory_space<vmem>>, vector<1x128xf32>
    %c0_12 = arith.constant 0 : index
    %c0_13 = arith.constant 0 : index
    %8 = vector.load %arg6[%c0_12, %c0_13] : memref<128x384xf32, #tpu.memory_space<vmem>>, vector<128x384xf32>
    %c0_14 = arith.constant 0 : index
    %c0_15 = arith.constant 0 : index
    %9 = vector.load %arg7[%c0_14, %c0_15] : memref<128x256xf32, #tpu.memory_space<vmem>>, vector<128x256xf32>
    %c0_16 = arith.constant 0 : index
    %c0_17 = arith.constant 0 : index
    %10 = vector.load %arg8[%c0_16, %c0_17] : memref<128x128xf32, #tpu.memory_space<vmem>>, vector<128x128xf32>
    %c0_18 = arith.constant 0 : index
    %c0_19 = arith.constant 0 : index
    %11 = vector.load %arg9[%c0_18, %c0_19] : memref<1x384xf32, #tpu.memory_space<vmem>>, vector<1x384xf32>
    %c0_20 = arith.constant 0 : index
    %c0_21 = arith.constant 0 : index
    %12 = vector.load %arg10[%c0_20, %c0_21] : memref<1x256xf32, #tpu.memory_space<vmem>>, vector<1x256xf32>
    %c0_22 = arith.constant 0 : index
    %c0_23 = arith.constant 0 : index
    %13 = vector.load %arg11[%c0_22, %c0_23] : memref<1x128xf32, #tpu.memory_space<vmem>>, vector<1x128xf32>
    %cst = arith.constant dense<0.000000e+00> : vector<8x128xf32>
    %14 = tpu.matmul %1, %6, %cst {dimension_numbers = #tpu.dot_dimension_numbers<[1], [0], [0], [1], [0, 0, 1, 1], [], []>} : vector<8x16xf32>, vector<16x128xf32>, vector<8x128xf32> -> vector<8x128xf32>
    %15 = vector.broadcast %7 : vector<1x128xf32> to vector<8x128xf32>
    %16 = arith.addf %14, %15 : vector<8x128xf32>
    %17 = math.tanh %16 : vector<8x128xf32>
    %18 = vector.broadcast %5 : vector<8x1xf32> to vector<8x128xf32>
    %19 = arith.mulf %18, %17 : vector<8x128xf32>
    %cst_24 = arith.constant dense<0.000000e+00> : vector<8x128xf32>
    %20 = tpu.matmul %3, %19, %cst_24 {dimension_numbers = #tpu.dot_dimension_numbers<[1], [0], [0], [1], [0, 0, 1, 1], [], []>} : vector<8x8xf32>, vector<8x128xf32>, vector<8x128xf32> -> vector<8x128xf32>
    %cst_25 = arith.constant dense<0.000000e+00> : vector<8x384xf32>
    %21 = tpu.matmul %20, %8, %cst_25 {dimension_numbers = #tpu.dot_dimension_numbers<[1], [0], [0], [1], [0, 0, 1, 1], [], []>} : vector<8x128xf32>, vector<128x384xf32>, vector<8x384xf32> -> vector<8x384xf32>
    %22 = vector.broadcast %11 : vector<1x384xf32> to vector<8x384xf32>
    %23 = arith.addf %21, %22 : vector<8x384xf32>
    %cst_26 = arith.constant dense<0.000000e+00> : vector<8x256xf32>
    %24 = tpu.matmul %19, %9, %cst_26 {dimension_numbers = #tpu.dot_dimension_numbers<[1], [0], [0], [1], [0, 0, 1, 1], [], []>} : vector<8x128xf32>, vector<128x256xf32>, vector<8x256xf32> -> vector<8x256xf32>
    %25 = vector.broadcast %12 : vector<1x256xf32> to vector<8x256xf32>
    %26 = arith.addf %24, %25 : vector<8x256xf32>
    %27 = vector.extract_strided_slice %23 {offsets = [0, 0], sizes = [8, 128], strides = [1, 1]} : vector<8x384xf32> to vector<8x128xf32>
    %28 = vector.extract_strided_slice %26 {offsets = [0, 0], sizes = [8, 128], strides = [1, 1]} : vector<8x256xf32> to vector<8x128xf32>
    %29 = arith.addf %27, %28 : vector<8x128xf32>
    %30 = arith.negf %29 : vector<8x128xf32>
    %31 = math.exp %30 : vector<8x128xf32>
    %cst_27 = arith.constant 1.000000e+00 : f32
    %32 = vector.broadcast %cst_27 : f32 to vector<8x128xf32>
    %33 = arith.addf %32, %31 : vector<8x128xf32>
    %34 = arith.divf %32, %33 : vector<8x128xf32>
    %35 = vector.extract_strided_slice %23 {offsets = [0, 128], sizes = [8, 128], strides = [1, 1]} : vector<8x384xf32> to vector<8x128xf32>
    %36 = vector.extract_strided_slice %26 {offsets = [0, 128], sizes = [8, 128], strides = [1, 1]} : vector<8x256xf32> to vector<8x128xf32>
    %37 = arith.addf %35, %36 : vector<8x128xf32>
    %38 = arith.negf %37 : vector<8x128xf32>
    %39 = math.exp %38 : vector<8x128xf32>
    %cst_28 = arith.constant 1.000000e+00 : f32
    %40 = vector.broadcast %cst_28 : f32 to vector<8x128xf32>
    %41 = arith.addf %40, %39 : vector<8x128xf32>
    %42 = arith.divf %40, %41 : vector<8x128xf32>
    %43 = arith.mulf %42, %19 : vector<8x128xf32>
    %cst_29 = arith.constant dense<0.000000e+00> : vector<8x128xf32>
    %44 = tpu.matmul %43, %10, %cst_29 {dimension_numbers = #tpu.dot_dimension_numbers<[1], [0], [0], [1], [0, 0, 1, 1], [], []>} : vector<8x128xf32>, vector<128x128xf32>, vector<8x128xf32> -> vector<8x128xf32>
    %45 = vector.broadcast %13 : vector<1x128xf32> to vector<8x128xf32>
    %46 = arith.addf %44, %45 : vector<8x128xf32>
    %47 = vector.extract_strided_slice %23 {offsets = [0, 256], sizes = [8, 128], strides = [1, 1]} : vector<8x384xf32> to vector<8x128xf32>
    %48 = arith.addf %47, %46 : vector<8x128xf32>
    %49 = vector.broadcast %5 : vector<8x1xf32> to vector<8x128xf32>
    %50 = arith.mulf %49, %48 : vector<8x128xf32>
    %51 = math.tanh %50 : vector<8x128xf32>
    %52 = arith.mulf %51, %34 : vector<8x128xf32>
    %cst_30 = arith.constant 1.000000e+00 : f32
    %53 = vector.broadcast %cst_30 : f32 to vector<8x128xf32>
    %54 = arith.subf %53, %34 : vector<8x128xf32>
    %55 = arith.mulf %19, %54 : vector<8x128xf32>
    %56 = arith.addf %52, %55 : vector<8x128xf32>
    %cst_31 = arith.constant dense<0.000000e+00> : vector<8x128xf32>
    %57 = tpu.matmul %3, %56, %cst_31 {dimension_numbers = #tpu.dot_dimension_numbers<[1], [0], [0], [1], [0, 0, 1, 1], [], []>} : vector<8x8xf32>, vector<8x128xf32>, vector<8x128xf32> -> vector<8x128xf32>
    %cst_32 = arith.constant dense<0.000000e+00> : vector<8x384xf32>
    %58 = tpu.matmul %57, %8, %cst_32 {dimension_numbers = #tpu.dot_dimension_numbers<[1], [0], [0], [1], [0, 0, 1, 1], [], []>} : vector<8x128xf32>, vector<128x384xf32>, vector<8x384xf32> -> vector<8x384xf32>
    %59 = vector.broadcast %11 : vector<1x384xf32> to vector<8x384xf32>
    %60 = arith.addf %58, %59 : vector<8x384xf32>
    %cst_33 = arith.constant dense<0.000000e+00> : vector<8x256xf32>
    %61 = tpu.matmul %56, %9, %cst_33 {dimension_numbers = #tpu.dot_dimension_numbers<[1], [0], [0], [1], [0, 0, 1, 1], [], []>} : vector<8x128xf32>, vector<128x256xf32>, vector<8x256xf32> -> vector<8x256xf32>
    %62 = vector.broadcast %12 : vector<1x256xf32> to vector<8x256xf32>
    %63 = arith.addf %61, %62 : vector<8x256xf32>
    %64 = vector.extract_strided_slice %60 {offsets = [0, 0], sizes = [8, 128], strides = [1, 1]} : vector<8x384xf32> to vector<8x128xf32>
    %65 = vector.extract_strided_slice %63 {offsets = [0, 0], sizes = [8, 128], strides = [1, 1]} : vector<8x256xf32> to vector<8x128xf32>
    %66 = arith.addf %64, %65 : vector<8x128xf32>
    %67 = arith.negf %66 : vector<8x128xf32>
    %68 = math.exp %67 : vector<8x128xf32>
    %cst_34 = arith.constant 1.000000e+00 : f32
    %69 = vector.broadcast %cst_34 : f32 to vector<8x128xf32>
    %70 = arith.addf %69, %68 : vector<8x128xf32>
    %71 = arith.divf %69, %70 : vector<8x128xf32>
    %72 = vector.extract_strided_slice %60 {offsets = [0, 128], sizes = [8, 128], strides = [1, 1]} : vector<8x384xf32> to vector<8x128xf32>
    %73 = vector.extract_strided_slice %63 {offsets = [0, 128], sizes = [8, 128], strides = [1, 1]} : vector<8x256xf32> to vector<8x128xf32>
    %74 = arith.addf %72, %73 : vector<8x128xf32>
    %75 = arith.negf %74 : vector<8x128xf32>
    %76 = math.exp %75 : vector<8x128xf32>
    %cst_35 = arith.constant 1.000000e+00 : f32
    %77 = vector.broadcast %cst_35 : f32 to vector<8x128xf32>
    %78 = arith.addf %77, %76 : vector<8x128xf32>
    %79 = arith.divf %77, %78 : vector<8x128xf32>
    %80 = arith.mulf %79, %56 : vector<8x128xf32>
    %cst_36 = arith.constant dense<0.000000e+00> : vector<8x128xf32>
    %81 = tpu.matmul %80, %10, %cst_36 {dimension_numbers = #tpu.dot_dimension_numbers<[1], [0], [0], [1], [0, 0, 1, 1], [], []>} : vector<8x128xf32>, vector<128x128xf32>, vector<8x128xf32> -> vector<8x128xf32>
    %82 = vector.broadcast %13 : vector<1x128xf32> to vector<8x128xf32>
    %83 = arith.addf %81, %82 : vector<8x128xf32>
    %84 = vector.extract_strided_slice %60 {offsets = [0, 256], sizes = [8, 128], strides = [1, 1]} : vector<8x384xf32> to vector<8x128xf32>
    %85 = arith.addf %84, %83 : vector<8x128xf32>
    %86 = vector.broadcast %5 : vector<8x1xf32> to vector<8x128xf32>
    %87 = arith.mulf %86, %85 : vector<8x128xf32>
    %88 = math.tanh %87 : vector<8x128xf32>
    %89 = arith.mulf %88, %71 : vector<8x128xf32>
    %cst_37 = arith.constant 1.000000e+00 : f32
    %90 = vector.broadcast %cst_37 : f32 to vector<8x128xf32>
    %91 = arith.subf %90, %71 : vector<8x128xf32>
    %92 = arith.mulf %56, %91 : vector<8x128xf32>
    %93 = arith.addf %89, %92 : vector<8x128xf32>
    %c0_38 = arith.constant 0 : index
    %c0_39 = arith.constant 0 : index
    %c0_40 = arith.constant 0 : index
    %94 = vector.load %arg12[%c0_38, %c0_39, %c0_40] : memref<1x8x128xf32, #tpu.memory_space<vmem>>, vector<1x8x128xf32>
    %95 = vector.shape_cast %94 : vector<1x8x128xf32> to vector<8x128xf32>
    %96 = vector.shape_cast %93 : vector<8x128xf32> to vector<1x8x128xf32>
    tpu.vector_store %arg12[%c0_38, %c0_39, %c0_40], %96 {strides = array<i32>} : memref<1x8x128xf32, #tpu.memory_space<vmem>>, vector<1x8x128xf32>,
    return
  }
  func.func @transform_0(%arg0: i32) -> (i32, i32, i32) {
    %c0_i32 = arith.constant 0 : i32
    %c0_i32_0 = arith.constant 0 : i32
    %c0_i32_1 = arith.constant 0 : i32
    return %arg0, %c0_i32, %c0_i32_0 : i32, i32, i32
  }
  func.func @transform_1(%arg0: i32) -> (i32, i32, i32) {
    %c0_i32 = arith.constant 0 : i32
    %c0_i32_0 = arith.constant 0 : i32
    %c0_i32_1 = arith.constant 0 : i32
    return %arg0, %c0_i32, %c0_i32_0 : i32, i32, i32
  }
  func.func @transform_2(%arg0: i32) -> (i32, i32, i32) {
    %c0_i32 = arith.constant 0 : i32
    %c0_i32_0 = arith.constant 0 : i32
    %c0_i32_1 = arith.constant 0 : i32
    return %arg0, %c0_i32, %c0_i32_0 : i32, i32, i32
  }
  func.func @transform_3(%arg0: i32) -> (i32, i32) {
    %c0_i32 = arith.constant 0 : i32
    %c0_i32_0 = arith.constant 0 : i32
    %c0_i32_1 = arith.constant 0 : i32
    return %c0_i32, %c0_i32_0 : i32, i32
  }
  func.func @transform_4(%arg0: i32) -> (i32, i32) {
    %c0_i32 = arith.constant 0 : i32
    %c0_i32_0 = arith.constant 0 : i32
    %c0_i32_1 = arith.constant 0 : i32
    return %c0_i32, %c0_i32_0 : i32, i32
  }
  func.func @transform_5(%arg0: i32) -> (i32, i32) {
    %c0_i32 = arith.constant 0 : i32
    %c0_i32_0 = arith.constant 0 : i32
    %c0_i32_1 = arith.constant 0 : i32
    return %c0_i32, %c0_i32_0 : i32, i32
  }
  func.func @transform_6(%arg0: i32) -> (i32, i32) {
    %c0_i32 = arith.constant 0 : i32
    %c0_i32_0 = arith.constant 0 : i32
    %c0_i32_1 = arith.constant 0 : i32
    return %c0_i32, %c0_i32_0 : i32, i32
  }
  func.func @transform_7(%arg0: i32) -> (i32, i32) {
    %c0_i32 = arith.constant 0 : i32
    %c0_i32_0 = arith.constant 0 : i32
    %c0_i32_1 = arith.constant 0 : i32
    return %c0_i32, %c0_i32_0 : i32, i32
  }
  func.func @transform_8(%arg0: i32) -> (i32, i32) {
    %c0_i32 = arith.constant 0 : i32
    %c0_i32_0 = arith.constant 0 : i32
    %c0_i32_1 = arith.constant 0 : i32
    return %c0_i32, %c0_i32_0 : i32, i32
  }
  func.func @transform_9(%arg0: i32) -> (i32, i32) {
    %c0_i32 = arith.constant 0 : i32
    %c0_i32_0 = arith.constant 0 : i32
    %c0_i32_1 = arith.constant 0 : i32
    return %c0_i32, %c0_i32_0 : i32, i32
  }
  func.func @transform_10(%arg0: i32) -> (i32, i32) {
    %c0_i32 = arith.constant 0 : i32
    %c0_i32_0 = arith.constant 0 : i32
    %c0_i32_1 = arith.constant 0 : i32
    return %c0_i32, %c0_i32_0 : i32, i32
  }
  func.func @transform_11(%arg0: i32) -> (i32, i32, i32) {
    %c0_i32 = arith.constant 0 : i32
    %c0_i32_0 = arith.constant 0 : i32
    %c0_i32_1 = arith.constant 0 : i32
    return %arg0, %c0_i32, %c0_i32_0 : i32, i32, i32
  }
}

</mosaic_0001>

<bundles_post_ra>
// kernel: graph_layer_forward.1
= control target key start
LH: loop header
LB: loop body
LE: loop exit
PB: predicated region body
PF: predicated region fallthrough
CT: control target
= control target key end

     0   :  { %s2883_s0 = inlined_call_operand.vmem [shape: f32[2,8,16], index: 0, kind: input, shape index: {}]   ;;  %s2884_s1 = inlined_call_operand.vmem [shape: f32[2,8,8], index: 1, kind: input, shape index: {}]   ;;  %s2885_s2 = inlined_call_operand.vmem [shape: f32[2,8,1], index: 2, kind: input, shape index: {}]   ;;  %s2886_s3 = inlined_call_operand.vmem [shape: f32[16,128], index: 3, kind: input, shape index: {}]   ;;  %s2887_s4 = inlined_call_operand.vmem [shape: f32[1,128], index: 4, kind: input, shape index: {}]   ;;  %s2888_s5 = inlined_call_operand.vmem [shape: f32[128,384], index: 5, kind: input, shape index: {}]   ;;  %s2889_s6 = inlined_call_operand.vmem [shape: f32[128,256], index: 6, kind: input, shape index: {}]   ;;  %s2890_s7 = inlined_call_operand.vmem [shape: f32[128,128], index: 7, kind: input, shape index: {}]   ;;  %s2891_s8 = inlined_call_operand.vmem [shape: f32[1,384], index: 8, kind: input, shape index: {}]   ;;  %s2892_s9 = inlined_call_operand.vmem [shape: f32[1,256], index: 9, kind: input, shape index: {}]   ;;  %s2893_s10 = inlined_call_operand.vmem [shape: f32[1,128], index: 10, kind: input, shape index: {}]   ;;  %s2894_s11 = inlined_call_operand.hbm [shape: f32[2,8,128], index: 11, kind: output, shape index: {}]  }
   0x1   :  { %2901 = sst [smem:[#allocation7_spill]] %s2883_s0 }
   0x2   :  { %2902 = sst [smem:[#allocation8_spill]] %s2886_s3 }
   0x3   :  { %16 = vsyncpa [#allocation3], 0 }
   0x4   :  { %18 = vsyncpa [#allocation3 + $0x1], 0  ;;  %s2186_s17 = smov 0   ;;  %s2188_s18 = smov 0  }
   0x5   :  { %s2190_s19 = smov 0   ;;  %s2192_s20 = smov 0  }
   0x6 LB: > { %s2207_s21 = sadd.s32 4294967295, %s2119_s20   ;;  %s1491_s22 = sadd.s32 4294967294, %s2119_s20   ;;  %s2119_s20 = sphi %s2192_s20, %s2916_s20   ;;  %s2115_s19 = sphi %s2190_s19, %s2915_s19   ;;  %s2111_s18 = sphi %s2188_s18, %s2914_s18   ;;  %s2107_s17 = sphi %s2186_s17, %s2913_s17  }
   0x7   : > { %s2211_s23 = sadd.s32 1, %s2119_s20   ;;  %s277_s24 = sadd.s32 1, %s2115_s19 }
   0x8   : > { %s274_s25 = ssub.s32 %s2119_s20, %s2211_s23  ;;  %p287_p0 = scmp.ne.s32.totalorder %s2115_s19, %s2111_s18 }
   0x9   : > { %p275_p1 = scmp.eq.s32.totalorder %s274_s25, 0  ;;  %p288_p2 = scmp.eq.s32.totalorder %s2207_s21, 1 }
   0xa   : > { %p293_p3 = scmp.ne.s32.totalorder %s2111_s18, %s2107_s17  ;;  %p294_p4 = scmp.eq.s32.totalorder %s1491_s22, 1 }
   0xb   : > { %s2222_s26 = scalar_select %p275_p1, %s2115_s19, %s277_s24  }
   0xc   : > { %p2224_p5 = por %p288_p2, %p287_p0  ;;  %p2228_p6 = por %p294_p4, %p293_p3 }
   0xd   : > { %p1494_p7 = scmp.ge.s32.totalorder %s2119_s20, 1  ;;  %p357_p8 = scmp.lt.s32.totalorder %s2119_s20, 3 }
   0xf   : > { %p358_p9 = pnand %p1494_p7, %p357_p8 }
  0x11   : > { %361 = sbr.rel (%p358_p9) target bundleno = 1715 (0x6b3), region = 64 }
  0x18   : > { %s2905_s3 = sld [smem:[#allocation8_spill]]  ;;  %p404_p10 = scmp.lt.s32.totalorder %s2207_s21, 1  ;;  %v2895_v2 = vmov 0.0|0.0   ;;  %vm2122_vm0 = vmmov 0   ;;  %v2897_v4 = vmov 0.0   ;;  %v2124_v5 = vmov 0  }
  0x19   : > { %1744 = vmatprep.subr.bf16.mxu0 %v2895_v2  ;;  %1591 = vmatprep.mubr.msk.f32.mxu0 %vm2122_vm0, %v2897_v4  ;;  %vm527_vm1 = vcmask 130048   ;;  %s2906_s0 = sld [smem:[#allocation7_spill]]  ;;  %v424_v8 = vld [vmem:[%s2888_s5 + $0x10] sm:$0xff]  ;;  %v427_v9 = vld [vmem:[%s2888_s5 + $0x28] sm:$0xff]  ;;  %v430_v11 = vld [vmem:[%s2888_s5 + $0x40] sm:$0xff]  ;;  %vm608_vm2 = vcmask 64512  }
  0x1a   : > { %s405_s14 = scalar_select %p404_p10, %s2207_s21, 1  ;;  %2034 = vset.pattern.permute.xlu0 %v2124_v5  ;;  %1594 = vmatprep.subr.mxu1 %v2897_v4  ;;  %v2267_v10 = vpack.c.bf16 %v427_v9, %v424_v8  ;;  %v433_v12 = vld [vmem:[%s2888_s5 + $0x58] sm:$0xff]  ;;  %v436_v14 = vld [vmem:[%s2888_s5 + $0x70] sm:$0xff]  ;;  %v439_v15 = vld [vmem:[%s2888_s5 + $0x88] sm:$0xff] }
  0x1b   : > { %1596 = vmatprep.mubr.msk.f32.mxu1 %vm2122_vm0, %v2897_v4  ;;  %v2277_v13 = vpack.c.bf16 %v433_v12, %v430_v11  ;;  %v2287_v16 = vpack.c.bf16 %v439_v15, %v436_v14  ;;  %v442_v17 = vld [vmem:[%s2888_s5 + $0xa0] sm:$0xff]  ;;  %v445_v18 = vld [vmem:[%s2888_s5 + $0xb8] sm:$0xff]  ;;  %v448_v20 = vld [vmem:[%s2888_s5 + $0xd0] sm:$0xff] }
  0x1c   : > { %s2248_s15 = sshll.u32 %s405_s14, 3  ;;  %v2297_v19 = vpack.c.bf16 %v445_v18, %v442_v17  ;;  %v451_v21 = vld [vmem:[%s2888_s5 + $0xe8] sm:$0xff]  ;;  %v454_v23 = vld [vmem:[%s2888_s5 + $0x100] sm:$0xff]  ;;  %v457_v24 = vld [vmem:[%s2888_s5 + $0x118] sm:$0xff] }
  0x1d   : > { %s415_s30 = scalar_lea.vmem %s2885_s2, %s2248_s15  ;;  %v2307_v22 = vpack.c.bf16 %v451_v21, %v448_v20  ;;  %v2317_v25 = vpack.c.bf16 %v457_v24, %v454_v23  ;;  %v460_v26 = vld [vmem:[%s2888_s5 + $0x130] sm:$0xff]  ;;  %v463_v27 = vld [vmem:[%s2888_s5 + $0x148] sm:$0xff]  ;;  %v466_v29 = vld [vmem:[%s2888_s5 + $0x160] sm:$0xff] }
  0x1e   : > { %v419_v0 = vld [vmem:[%s2905_s3] sm:$0xff]  ;;  %v420_v1 = vld [vmem:[%s2905_s3 + $0x8] sm:$0xff]  ;;  %v2327_v28 = vpack.c.bf16 %v463_v27, %v460_v26  ;;  %v469_v30 = vld [vmem:[%s2888_s5 + $0x178] sm:$0xff] }
  0x1f   : > { %v1745_v3 = vpack.c.bf16 %v420_v1, %v419_v0  ;;  %s407_s24 = scalar_lea.vmem %s2906_s0, %s2248_s15  ;;  %v418_v7 = vld [vmem:[%s415_s30] sm:$0xff]  ;;  %v2337_v31 = vpack.c.bf16 %v469_v30, %v466_v29  ;;  %v423_v36 = vld [vmem:[%s2888_s5 + $0x8] sm:$0xff]  ;;  %s411_s30 = scalar_lea.vmem %s2884_s1, %s2248_s15  ;;  %v425_v40 = vld [vmem:[%s2888_s5 + $0x18] sm:$0xff] }
  0x20   : > { %v416_v6 = vld [vmem:[%s407_s24] sm:$0xff]  ;;  %604 = vperm.xlu0 %2034, %v418_v7   ;;  %v429_v41 = vld [vmem:[%s2888_s5 + $0x38] sm:$0xff]  ;;  %v432_v42 = vld [vmem:[%s2888_s5 + $0x50] sm:$0xff]  ;;  %s401_s24 = sand.u32 1, %s2111_s18   ;;  %s1509_s0 = sshll.u32 %s2207_s21, 7 }
  0x21   : > { %1746 = vmatpush3.bf16.msra.mxu0 %v1745_v3  ;;  %v1499_v32 = vld [vmem:[%s2887_s4] ss:$0 sm:$0xff]  ;;  %v2377_v48 = vpack.c.bf16 %v432_v42, %v429_v41  ;;  %v428_v49 = vld [vmem:[%s2888_s5 + $0x30] sm:$0xff]  ;;  %v431_v50 = vld [vmem:[%s2888_s5 + $0x48] sm:$0xff]  ;;  %s1495_s25 = sshll.u32 %s401_s24, 3  ;;  %s2841_s13 = scalar_lea.hbm %s2894_s11, %s1509_s0 }
  0x22   : > { %1779 = vmatprep.subr.bf16.mxu0 %v2895_v2  ;;  %v426_v37 = vld [vmem:[%s2888_s5 + $0x20] sm:$0xff]  ;;  %v435_v51 = vld [vmem:[%s2888_s5 + $0x68] sm:$0xff]  ;;  %v2396_v53 = vpack.c.bf16 %v431_v50, %v428_v49  ;;  %v437_v56 = vld [vmem:[%s2888_s5 + $0x78] sm:$0xff]  ;;  %s403_s15 = scalar_lea.vmem [#allocation2], %s1495_s25  ;;  %s2125_s21 = smov [#allocation2]  }
  0x23   : > { %v422_v39 = vld [vmem:[%s2888_s5] sm:$0xff]  ;;  %v2368_v44 = vpack.c.bf16 %v426_v37, %v423_v36  ;;  %v441_v57 = vld [vmem:[%s2888_s5 + $0x98] sm:$0xff]  ;;  %v444_v58 = vld [vmem:[%s2888_s5 + $0xb0] sm:$0xff]  ;;  %s1408_s3 = sshll.u32 %s403_s15, 4  ;;  %s2061_s16 = sshll.u32 %s2125_s21, 4  ;;  %s2843_s3 = int_to_ptr.vmem [resolvable:$true] %s1408_s3  ;;  %s2062_s16 = int_to_ptr.vmem [resolvable:$false] %s2061_s16 }
  0x24   : > { %1592 = vmatmul.mubr.msk.f32.vlgmr.msra.gmra.mrb[0].mxu0 %vm527_vm1, %v416_v6  ;;  %v2373_v46 = vld [vmem:[%s411_s30] sm:$0xff]  ;;  %v2375_v47 = vpack.c.bf16 %v425_v40, %v422_v39  ;;  %v2418_v60 = vpack.c.bf16 %v444_v58, %v441_v57  ;;  %v440_v61 = vld [vmem:[%s2888_s5 + $0x90] sm:$0xff]  ;;  %v443_v62 = vld [vmem:[%s2888_s5 + $0xa8] sm:$0xff]  ;;  %s1395_s30 = scalar_lea.sflag [#allocation3], %s401_s24  ;;  %s2057_s14 = scalar_lea.vmem %s2843_s3, 128 }
  0x25   : > { %1631 = vmatprep.mubr.msk.f32.mxu0 %vm2122_vm0, %v2897_v4  ;;  %1781 = vmatpush3.bf16.msra.mxu0 %v2267_v10  ;;  %v438_v52 = vld [vmem:[%s2888_s5 + $0x80] sm:$0xff]  ;;  %v447_v63 = vld [vmem:[%s2888_s5 + $0xc8] sm:$0xff]  ;;  %v2433_v1 = vpack.c.bf16 %v443_v62, %v440_v61  ;;  %v449_v6 = vld [vmem:[%s2888_s5 + $0xd8] sm:$0xff]  ;;  %p2058_p11 = scmp.ne.s32.totalorder %s2843_s3, %s2057_s14  ;;  %s2063_s22 = scalar_lea.vmem %s2062_s16, 256 }
  0x26   : > { %1782 = vmatprep.subr.bf16.mxu0 %v2895_v2  ;;  %v2400_v54 = vpack.c.bf16 %v438_v52, %v435_v51  ;;  %v434_v55 = vld [vmem:[%s2888_s5 + $0x60] sm:$0xff]  ;;  %v453_v7 = vld [vmem:[%s2888_s5 + $0xf8] sm:$0xff]  ;;  %v456_v8 = vld [vmem:[%s2888_s5 + $0x110] sm:$0xff]  ;;  %p2064_p0 = scmp.lt.s32.totalorder %s2843_s3, %s2062_s16  ;;  %p2065_p1 = scmp.lt.s32.totalorder %s2063_s22, %s2057_s14 }
  0x27   : > { %v2415_v59 = vpack.c.bf16 %v437_v56, %v434_v55  ;;  %v450_v0 = vld [vmem:[%s2888_s5 + $0xe0] sm:$0xff]  ;;  %v2454_v11 = vpack.c.bf16 %v456_v8, %v453_v7  ;;  %v452_v12 = vld [vmem:[%s2888_s5 + $0xf0] sm:$0xff]  ;;  %v455_v14 = vld [vmem:[%s2888_s5 + $0x108] sm:$0xff]  ;;  %p2059_p12 = pnand %p2058_p11, %p2224_p5 }
  0x28   : > { %v2436_v3 = vpack.c.bf16 %v450_v0, %v447_v63  ;;  %v446_v5 = vld [vmem:[%s2888_s5 + $0xc0] sm:$0xff]  ;;  %v459_v15 = vld [vmem:[%s2888_s5 + $0x128] sm:$0xff]  ;;  %v2469_v18 = vpack.c.bf16 %v455_v14, %v452_v12  ;;  %v461_v23 = vld [vmem:[%s2888_s5 + $0x138] sm:$0xff]  ;;  %p2066_p2 = por %p2065_p1, %p2064_p0 }
  0x29   : > { %1784 = vmatpush3.bf16.msra.mxu0 %v2277_v13  ;;  %v2451_v9 = vpack.c.bf16 %v449_v6, %v446_v5  ;;  %v462_v17 = vld [vmem:[%s2888_s5 + $0x140] sm:$0xff]  ;;  %v465_v24 = vld [vmem:[%s2888_s5 + $0x158] sm:$0xff]  ;;  %v468_v26 = vld [vmem:[%s2888_s5 + $0x170] sm:$0xff]  ;;  %p2060_p13 = pneg %p2059_p12 }
  0x2a   : > { %1785 = vmatprep.subr.bf16.mxu0 %v2895_v2  ;;  %v2472_v20 = vpack.c.bf16 %v462_v17, %v459_v15  ;;  %v458_v21 = vld [vmem:[%s2888_s5 + $0x120] sm:$0xff]  ;;  %v2490_v29 = vpack.c.bf16 %v468_v26, %v465_v24  ;;  %v464_v30 = vld [vmem:[%s2888_s5 + $0x150] sm:$0xff]  ;;  %v475_v40 = vld [vmem:[%s2889_s6 + $0x28] sm:$0xff] }
  0x2b   : > { %v2487_v27 = vpack.c.bf16 %v461_v23, %v458_v21  ;;  %v470_v37 = vld [vmem:[%s2889_s6] sm:$0xff]  ;;  %v472_v39 = vld [vmem:[%s2889_s6 + $0x10] sm:$0xff]  ;;  %v477_v41 = vld [vmem:[%s2889_s6 + $0x38] sm:$0xff]  ;;  %p2067_p3 = pnand %p2066_p2, %p2060_p13 }
  0x2c   : > { %v2524_v42 = vpack.c.bf16 %v472_v39, %v470_v37  ;;  %v474_v49 = vld [vmem:[%s2889_s6 + $0x20] sm:$0xff]  ;;  %v476_v50 = vld [vmem:[%s2889_s6 + $0x30] sm:$0xff]  ;;  %v479_v52 = vld [vmem:[%s2889_s6 + $0x48] sm:$0xff] }
  0x2d   : > { %1787 = vmatpush3.bf16.msra.mxu0 %v2287_v16  ;;  %v481_v55 = vld [vmem:[%s2889_s6 + $0x58] sm:$0xff]  ;;  %v2541_v57 = vpack.c.bf16 %v476_v50, %v474_v49  ;;  %v478_v61 = vld [vmem:[%s2889_s6 + $0x40] sm:$0xff]  ;;  %v480_v62 = vld [vmem:[%s2889_s6 + $0x50] sm:$0xff] }
  0x2e   : > { %1788 = vmatprep.subr.bf16.mxu0 %v2895_v2  ;;  %v2545_v58 = vpack.c.bf16 %v481_v55, %v479_v52  ;;  %v483_v63 = vld [vmem:[%s2889_s6 + $0x68] sm:$0xff]  ;;  %v485_v0 = vld [vmem:[%s2889_s6 + $0x78] sm:$0xff]  ;;  %v2562_v5 = vpack.c.bf16 %v480_v62, %v478_v61  ;;  %v482_v7 = vld [vmem:[%s2889_s6 + $0x60] sm:$0xff] }
  0x2f   : > { %v2565_v6 = vpack.c.bf16 %v485_v0, %v483_v63  ;;  %v484_v8 = vld [vmem:[%s2889_s6 + $0x70] sm:$0xff]  ;;  %v487_v12 = vld [vmem:[%s2889_s6 + $0x88] sm:$0xff]  ;;  %v489_v14 = vld [vmem:[%s2889_s6 + $0x98] sm:$0xff] }
  0x30   : > { %v2580_v15 = vpack.c.bf16 %v484_v8, %v482_v7  ;;  %v2583_v17 = vpack.c.bf16 %v489_v14, %v487_v12  ;;  %v486_v21 = vld [vmem:[%s2889_s6 + $0x80] sm:$0xff]  ;;  %v488_v23 = vld [vmem:[%s2889_s6 + $0x90] sm:$0xff]  ;;  %v491_v24 = vld [vmem:[%s2889_s6 + $0xa8] sm:$0xff] }
  0x31   : > { %1790 = vmatpush3.bf16.msra.mxu0 %v2297_v19  ;;  %v493_v26 = vld [vmem:[%s2889_s6 + $0xb8] sm:$0xff]  ;;  %v495_v37 = vld [vmem:[%s2889_s6 + $0xc8] sm:$0xff]  ;;  %v494_v49 = vld [vmem:[%s2889_s6 + $0xc0] sm:$0xff] }
  0x32   : > { %1791 = vmatprep.subr.bf16.mxu0 %v2895_v2  ;;  %v497_v39 = vld [vmem:[%s2889_s6 + $0xd8] sm:$0xff]  ;;  %v496_v50 = vld [vmem:[%s2889_s6 + $0xd0] sm:$0xff]  ;;  %v498_v61 = vld [vmem:[%s2889_s6 + $0xe0] sm:$0xff] }
  0x33   : > { %v501_v52 = vld [vmem:[%s2889_s6 + $0xf8] sm:$0xff]  ;;  %v2634_v55 = vpack.c.bf16 %v496_v50, %v494_v49  ;;  %v500_v62 = vld [vmem:[%s2889_s6 + $0xf0] sm:$0xff]  ;;  %v502_v0 = vld [vmem:[%s2890_s7] sm:$0xff] }
  0x34   : > { %v2646_v63 = vpack.c.bf16 %v500_v62, %v498_v61  ;;  %v503_v7 = vld [vmem:[%s2890_s7 + $0x8] sm:$0xff]  ;;  %v504_v12 = vld [vmem:[%s2890_s7 + $0x10] sm:$0xff]  ;;  %v505_v14 = vld [vmem:[%s2890_s7 + $0x18] sm:$0xff] }
  0x35   : > { %1793 = vmatpush3.bf16.msra.mxu0 %v2307_v22  ;;  %v2660_v8 = vpack.c.bf16 %v503_v7, %v502_v0  ;;  %v511_v49 = vld [vmem:[%s2890_s7 + $0x48] sm:$0xff]  ;;  %v514_v62 = vld [vmem:[%s2890_s7 + $0x60] sm:$0xff] }
  0x36   : > { %1794 = vmatprep.subr.bf16.mxu0 %v2895_v2  ;;  %2907 = vst [vmem:[#allocation5_spill] sm:$0xff] %v2646_v63  ;;  %v515_v0 = vld [vmem:[%s2890_s7 + $0x68] sm:$0xff] }
  0x37   : > { %v2719_v7 = vpack.c.bf16 %v515_v0, %v514_v62 }
  0x39   : > { %1796 = vmatpush3.bf16.msra.mxu0 %v2317_v25 }
  0x3a   : > { %1797 = vmatprep.subr.bf16.mxu0 %v2895_v2 }
  0x3d   : > { %1799 = vmatpush3.bf16.msra.mxu0 %v2327_v28 }
  0x3e   : > { %1800 = vmatprep.subr.bf16.mxu0 %v2895_v2 }
  0x41   : > { %1802 = vmatpush3.bf16.msra.mxu0 %v2337_v31 }
  0x42   : > { %1835 = vmatprep.subr.bf16.mxu0 %v2895_v2 }
  0x9f   : > { %v2350_v38 = vpop.permute.xlu0 %604 }
  0xf7   : > { %v597_v33 = vpop.f32.mrb[0].mxu0 }
  0xf8   : > { %v598_v34 = vadd.f32 %v1499_v32, %v597_v33  ;;  %v1593_v35 = vpop.f32.mrb[1].mxu0  ;;  %v467_v32 = vld [vmem:[%s2888_s5 + $0x168] sm:$0xff] }
  0xf9   : > { %v2499_v33 = vpack.c.bf16 %v467_v32, %v464_v30  ;;  %v473_v35 = vld [vmem:[%s2889_s6 + $0x18] sm:$0xff]  ;;  %v2598_v30 = vpack.c.bf16 %v488_v23, %v486_v21  ;;  %v2601_v32 = vpack.c.bf16 %v493_v26, %v491_v24  ;;  %v2670_v21 = vpack.c.bf16 %v505_v14, %v504_v12  ;;  %v506_v23 = vld [vmem:[%s2890_s7 + $0x20] sm:$0xff]  ;;  %v507_v24 = vld [vmem:[%s2890_s7 + $0x28] sm:$0xff] }
  0xfa   : > { %2035 = vtanh.f32 %v598_v34  ;;  %v471_v34 = vld [vmem:[%s2889_s6 + $0x8] sm:$0xff]  ;;  %v2680_v26 = vpack.c.bf16 %v507_v24, %v506_v23  ;;  %v516_v12 = vld [vmem:[%s2890_s7 + $0x70] sm:$0xff]  ;;  %v517_v14 = vld [vmem:[%s2890_s7 + $0x78] sm:$0xff]  ;;  %v683_v24 = vlaneseq }
  0xfb   : > { %v2509_v36 = vpack.c.bf16 %v473_v35, %v471_v34  ;;  %v490_v34 = vld [vmem:[%s2889_s6 + $0xa0] sm:$0xff]  ;;  %v492_v35 = vld [vmem:[%s2889_s6 + $0xb0] sm:$0xff]  ;;  %v2729_v23 = vpack.c.bf16 %v517_v14, %v516_v12 }
  0xfd   : > { %2908 = vst [vmem:[#allocation6_spill] sm:$0xff] %v2729_v23 }
 0x104   : > { %v2036_v43 = vpop.eup %2035 }
 0x105   : > { %v2371_v45 = vmul.f32 %v2036_v43, %v2350_v38  ;;  %v2526_v43 = vpack.c.bf16 %v477_v41, %v475_v40  ;;  %v2616_v40 = vpack.c.bf16 %v492_v35, %v490_v34  ;;  %v2619_v41 = vpack.c.bf16 %v497_v39, %v495_v37  ;;  %v508_v34 = vld [vmem:[%s2890_s7 + $0x30] sm:$0xff]  ;;  %v509_v35 = vld [vmem:[%s2890_s7 + $0x38] sm:$0xff]  ;;  %v510_v39 = vld [vmem:[%s2890_s7 + $0x40] sm:$0xff] }
 0x106   : > { %v2690_v37 = vpack.c.bf16 %v509_v35, %v508_v34  ;;  %v2700_v50 = vpack.c.bf16 %v511_v49, %v510_v39  ;;  %v684_v34 = vshrl.u32 %v683_v24, 7  ;;  %v518_v39 = vld [vmem:[%s2891_s8] sm:$0x7] }
 0x107   : > { %1595 = vmatpush3.msra.mxu1 %v2371_v45  ;;  %v519_v49 = vld [vmem:[%s2892_s9] sm:$0x3] }
 0x108   : > { %1597 = vmatmul.mubr.msk.f32.vlgmr.msra.gmra.mrb[0].mxu1 %vm608_vm2, %v2373_v46  ;;  %1748 = vmatprep.subr.bf16.mxu1 %v2368_v44  ;;  %v689_v35 = vsub.s32 1, %v684_v34 }
 0x109   : > { %1750 = vmatpush1.bf16.msra.mxu1 %v2375_v47  ;;  %762 = vmatprep.mubr.f32.mxu1 %v2897_v4 }
 0x10a   : > { %1752 = vmatprep.subr.bf16.mxu1 %v2377_v48 }
 0x10d   : > { %1754 = vmatpush1.bf16.msra.mxu1 %v2396_v53 }
 0x10e   : > { %1756 = vmatprep.subr.bf16.mxu1 %v2400_v54 }
 0x111   : > { %1758 = vmatpush1.bf16.msra.mxu1 %v2415_v59 }
 0x112   : > { %1760 = vmatprep.subr.bf16.mxu1 %v2418_v60 }
 0x115   : > { %1762 = vmatpush1.bf16.msra.mxu1 %v2433_v1 }
 0x116   : > { %1764 = vmatprep.subr.bf16.mxu1 %v2436_v3 }
 0x119   : > { %1766 = vmatpush1.bf16.msra.mxu1 %v2451_v9 }
 0x11a   : > { %1768 = vmatprep.subr.bf16.mxu1 %v2454_v11 }
 0x11d   : > { %1770 = vmatpush1.bf16.msra.mxu1 %v2469_v18 }
 0x11e   : > { %1772 = vmatprep.subr.bf16.mxu1 %v2472_v20 }
 0x121   : > { %1774 = vmatpush1.bf16.msra.mxu1 %v2487_v27 }
 0x122   : > { %1776 = vmatprep.subr.bf16.mxu1 %v2490_v29 }
 0x125   : > { %1778 = vmatpush1.bf16.msra.mxu1 %v2499_v33 }
 0x126   : > { %1804 = vmatprep.subr.bf16.mxu1 %v2509_v36 }
 0x1db   : > { %v678_v51 = vpop.f32.mrb[0].mxu1 }
 0x1dc   : > { %v1598_v56 = vpop.f32.mrb[1].mxu1  ;;  %763 = vmatmul.mubr.f32.vlgmr.msra.gmra.mrb[2].mxu1 %v678_v51  ;;  %1632 = vmatmul.mubr.f32.vlgmr.msra.gmra.mrb[2].mxu0 %v678_v51  ;;  %v499_v51 = vld [vmem:[%s2889_s6 + $0xe8] sm:$0xff] }
 0x1dd   : > { %1806 = vmatpush1.bf16.msra.mxu1 %v2524_v42  ;;  %914 = vmatprep.mubr.f32.mxu1 %v2897_v4  ;;  %v2637_v56 = vpack.c.bf16 %v501_v52, %v499_v51  ;;  %v512_v51 = vld [vmem:[%s2890_s7 + $0x50] sm:$0xff]  ;;  %v513_v52 = vld [vmem:[%s2890_s7 + $0x58] sm:$0xff] }
 0x1de   : > { %1808 = vmatprep.subr.bf16.mxu1 %v2526_v43  ;;  %1666 = vmatprep.mubr.msk.f32.mxu0 %vm2122_vm0, %v2897_v4  ;;  %v2710_v61 = vpack.c.bf16 %v513_v52, %v512_v51  ;;  %v690_v51 = vrot.slane %v518_v39, %v689_v35  ;;  %v847_v52 = vrot.slane %v519_v49, %v689_v35 }
 0x1df   : > { %1837 = vmatpush3.bf16.msra.mxu0 %v2660_v8 }
 0x1e0   : > { %1838 = vmatprep.subr.bf16.mxu0 %v2895_v2  ;;  %v2740_v62 = vadd.f32 %v847_v52, %v690_v51 }
 0x1e1   : > { %1810 = vmatpush1.bf16.msra.mxu1 %v2541_v57 }
 0x1e2   : > { %1812 = vmatprep.subr.bf16.mxu1 %v2545_v58 }
 0x1e3   : > { %1840 = vmatpush3.bf16.msra.mxu0 %v2670_v21 }
 0x1e4   : > { %1841 = vmatprep.subr.bf16.mxu0 %v2895_v2 }
 0x1e5   : > { %1814 = vmatpush1.bf16.msra.mxu1 %v2562_v5 }
 0x1e6   : > { %1816 = vmatprep.subr.bf16.mxu1 %v2565_v6 }
 0x1e7   : > { %1843 = vmatpush3.bf16.msra.mxu0 %v2680_v26 }
 0x1e8   : > { %1844 = vmatprep.subr.bf16.mxu0 %v2895_v2 }
 0x1e9   : > { %1818 = vmatpush1.bf16.msra.mxu1 %v2580_v15 }
 0x1ea   : > { %1820 = vmatprep.subr.bf16.mxu1 %v2583_v17 }
 0x1eb   : > { %1846 = vmatpush3.bf16.msra.mxu0 %v2690_v37 }
 0x1ec   : > { %1847 = vmatprep.subr.bf16.mxu0 %v2895_v2 }
 0x1ed   : > { %1822 = vmatpush1.bf16.msra.mxu1 %v2598_v30 }
 0x1ee   : > { %1824 = vmatprep.subr.bf16.mxu1 %v2601_v32 }
 0x1ef   : > { %1849 = vmatpush3.bf16.msra.mxu0 %v2700_v50 }
 0x1f0   : > { %1850 = vmatprep.subr.bf16.mxu0 %v2895_v2 }
 0x1f1   : > { %1826 = vmatpush1.bf16.msra.mxu1 %v2616_v40 }
 0x1f2   : > { %1828 = vmatprep.subr.bf16.mxu1 %v2619_v41 }
 0x1f3   : > { %1852 = vmatpush3.bf16.msra.mxu0 %v2710_v61 }
 0x1f4   : > { %1853 = vmatprep.subr.bf16.mxu0 %v2895_v2 }
 0x1f5   : > { %1830 = vmatpush1.bf16.msra.mxu1 %v2634_v55 }
 0x1f6   : > { %1832 = vmatprep.subr.bf16.mxu1 %v2637_v56 }
 0x1f7   : > { %1855 = vmatpush3.bf16.msra.mxu0 %v2719_v7 }
 0x1f8   : > { %1856 = vmatprep.subr.bf16.mxu0 %v2895_v2 }
 0x1f9   : > { %1834 = vmatpush1.bf16.msra.mxu1 %v2646_v63  ;;  %v2909_v63 = vmov 0.0  }
 0x1fa   : > { %1669 = vmatprep.subr.mxu1 %v2897_v4 }
 0x1fb   : > { %1858 = vmatpush3.bf16.msra.mxu0 %v2729_v23 }
 0x1fc   : > { %915 = vmatmul.mubr.f32.vlgmr.msra.gmra.mrb[2].mxu1 %v2371_v45  ;;  %1860 = vmatprep.subr.bf16.mxu0 %v2368_v44 }
 0x1fd   : > { %1671 = vmatprep.mubr.msk.f32.mxu1 %vm2122_vm0, %v2897_v4 }
 0x2cf   : > { %v916_v0 = vpop.f32.mrb[2].mxu1 }
 0x2d0   : > { %v918_v12 = vpop.f32.mrb[3].mxu1 }
 0x2d1   : > { %v1974_v14 = vadd.f32 %v2740_v62, %v918_v12 }
 0x2d3   : > { %v1503_v44 = vmul.f32 -1.442695, %v1974_v14 }
 0x2d5   : > { %2037 = vpow2.f32 %v1503_v44 }
 0x2df   : > { %v2038_v24 = vpop.eup %2037 }
 0x2e0   : > { %v932_v2 = vadd.f32 1.0, %v2038_v24 }
 0x2e2   : > { %2039 = vrcp.f32 %v932_v2  ;;  %v685_v2 = vsub.s32 0, %v684_v34 }
 0x2ec   : > { %v2040_v4 = vpop.eup %2039 }
 0x2ed   : > { %v935_v23 = vmul.f32 %v2040_v4, %v2371_v45  ;;  %v686_v4 = vrot.slane %v518_v39, %v685_v2 }
 0x2ef   : > { %1667 = vmatmul.mubr.f32.vlgmr.msra.gmra.mrb[2].mxu0 %v935_v23 }
 0x2f0   : > { %1862 = vmatpush1.bf16.msra.mxu0 %v2375_v47  ;;  %1153 = vmatprep.mubr.f32.mxu0 %v2909_v63  ;;  %v843_v47 = vrot.slane %v519_v49, %v685_v2  ;;  %v2910_v49 = vmov 0.0|0.0  }
 0x2f1   : > { %1864 = vmatprep.subr.bf16.mxu0 %v2377_v48 }
 0x2f2   : > { %v2761_v48 = vadd.f32 %v843_v47, %v686_v4 }
 0x2f4   : > { %1866 = vmatpush1.bf16.msra.mxu0 %v2396_v53  ;;  %v1972_v53 = vadd.f32 %v2761_v48, %v916_v0 }
 0x2f5   : > { %1868 = vmatprep.subr.bf16.mxu0 %v2400_v54 }
 0x2f6   : > { %v1502_v54 = vmul.f32 -1.442695, %v1972_v53 }
 0x2f8   : > { %1870 = vmatpush1.bf16.msra.mxu0 %v2415_v59  ;;  %2041 = vpow2.f32 %v1502_v54  ;;  %v693_v59 = vsub.s32 2, %v684_v34 }
 0x2f9   : > { %1872 = vmatprep.subr.bf16.mxu0 %v2418_v60 }
 0x2fc   : > { %1874 = vmatpush1.bf16.msra.mxu0 %v2433_v1  ;;  %v694_v1 = vrot.slane %v518_v39, %v693_v59 }
 0x2fd   : > { %1876 = vmatprep.subr.bf16.mxu0 %v2436_v3  ;;  %v1504_v3 = vld [vmem:[%s2893_s10] ss:$0 sm:$0xff] }
 0x300   : > { %1878 = vmatpush1.bf16.msra.mxu0 %v2451_v9 }
 0x301   : > { %1880 = vmatprep.subr.bf16.mxu0 %v2454_v11  ;;  %v2767_v11 = vadd.f32 %v1504_v3, %v694_v1 }
 0x302   : > { %v2042_v60 = vpop.eup %2041 }
 0x303   : > { %v925_v9 = vadd.f32 1.0, %v2042_v60 }
 0x304   : > { %1882 = vmatpush1.bf16.msra.mxu0 %v2469_v18 }
 0x305   : > { %1884 = vmatprep.subr.bf16.mxu0 %v2472_v20  ;;  %2043 = vrcp.f32 %v925_v9 }
 0x308   : > { %1886 = vmatpush1.bf16.msra.mxu0 %v2487_v27 }
 0x309   : > { %1888 = vmatprep.subr.bf16.mxu0 %v2490_v29 }
 0x30c   : > { %1890 = vmatpush1.bf16.msra.mxu0 %v2499_v33 }
 0x30d   : > { %1916 = vmatprep.subr.bf16.mxu0 %v2509_v36 }
 0x30f   : > { %v2044_v33 = vpop.eup %2043 }
 0x310   : > { %v1016_v36 = vsub.f32 1.0, %v2044_v33 }
 0x312   : > { %v1017_v35 = vmul.f32 %v1016_v36, %v2371_v45 }
 0x3c2   : > { %v1008_v18 = vpop.f32.mrb[2].mxu0 }
 0x3c3   : > { %v1976_v20 = vadd.f32 %v2767_v11, %v1008_v18  ;;  %v1668_v27 = vpop.f32.mrb[3].mxu0 }
 0x3c5   : > { %v1013_v29 = vmul.f32 %v1976_v20, %v2350_v38 }
 0x3c7   : > { %2045 = vtanh.f32 %v1013_v29 }
 0x3d1   : > { %v2046_v23 = vpop.eup %2045 }
 0x3d2   : > { %v1015_v34 = vmul.f32 %v2046_v23, %v2044_v33 }
 0x3d4   : > { %v2772_v39 = vadd.f32 %v1017_v35, %v1015_v34 }
 0x3d6   : > { %1670 = vmatpush3.msra.mxu1 %v2772_v39 }
 0x3d7   : > { %1672 = vmatmul.mubr.msk.f32.vlgmr.msra.gmra.mrb[4].mxu1 %vm608_vm2, %v2373_v46  ;;  %1891 = vmatprep.subr.bf16.mxu1 %v2910_v49 }
 0x3d8   : > { %1893 = vmatpush3.bf16.msra.mxu1 %v2267_v10  ;;  %1706 = vmatprep.mubr.msk.f32.mxu1 %vm2122_vm0, %v2909_v63 }
 0x3d9   : > { %1894 = vmatprep.subr.bf16.mxu1 %v2910_v49 }
 0x3dc   : > { %1896 = vmatpush3.bf16.msra.mxu1 %v2277_v13 }
 0x3dd   : > { %1897 = vmatprep.subr.bf16.mxu1 %v2910_v49 }
 0x3e0   : > { %1899 = vmatpush3.bf16.msra.mxu1 %v2287_v16  ;;  %v2911_v16 = vld [vmem:[#allocation5_spill] sm:$0xff] }
 0x3e1   : > { %1900 = vmatprep.subr.bf16.mxu1 %v2910_v49 }
 0x3e4   : > { %1902 = vmatpush3.bf16.msra.mxu1 %v2297_v19  ;;  %v2912_v19 = vld [vmem:[#allocation6_spill] sm:$0xff] }
 0x3e5   : > { %1903 = vmatprep.subr.bf16.mxu1 %v2910_v49 }
 0x3e8   : > { %1905 = vmatpush3.bf16.msra.mxu1 %v2307_v22 }
 0x3e9   : > { %1906 = vmatprep.subr.bf16.mxu1 %v2910_v49 }
 0x3ec   : > { %1908 = vmatpush3.bf16.msra.mxu1 %v2317_v25 }
 0x3ed   : > { %1909 = vmatprep.subr.bf16.mxu1 %v2910_v49 }
 0x3f0   : > { %1911 = vmatpush3.bf16.msra.mxu1 %v2327_v28 }
 0x3f1   : > { %1912 = vmatprep.subr.bf16.mxu1 %v2910_v49 }
 0x3f4   : > { %1914 = vmatpush3.bf16.msra.mxu1 %v2337_v31 }
 0x3f5   : > { %1947 = vmatprep.subr.bf16.mxu1 %v2910_v49 }
 0x4aa   : > { %v1085_v10 = vpop.f32.mrb[4].mxu1 }
 0x4ab   : > { %1154 = vmatmul.mubr.f32.vlgmr.msra.gmra.mrb[4].mxu0 %v1085_v10  ;;  %v1673_v13 = vpop.f32.mrb[5].mxu1  ;;  %1707 = vmatmul.mubr.f32.vlgmr.msra.gmra.mrb[6].mxu1 %v1085_v10 }
 0x4ac   : > { %1918 = vmatpush1.bf16.msra.mxu0 %v2524_v42  ;;  %1294 = vmatprep.mubr.f32.mxu0 %v2909_v63 }
 0x4ad   : > { %1920 = vmatprep.subr.bf16.mxu0 %v2526_v43  ;;  %1949 = vmatpush3.bf16.msra.mxu1 %v2660_v8 }
 0x4ae   : > { %1950 = vmatprep.subr.bf16.mxu1 %v2910_v49  ;;  %1741 = vmatprep.mubr.msk.f32.mxu1 %vm2122_vm0, %v2909_v63 }
 0x4b0   : > { %1922 = vmatpush1.bf16.msra.mxu0 %v2541_v57 }
 0x4b1   : > { %1924 = vmatprep.subr.bf16.mxu0 %v2545_v58  ;;  %1952 = vmatpush3.bf16.msra.mxu1 %v2670_v21 }
 0x4b2   : > { %1953 = vmatprep.subr.bf16.mxu1 %v2910_v49 }
 0x4b4   : > { %1926 = vmatpush1.bf16.msra.mxu0 %v2562_v5 }
 0x4b5   : > { %1928 = vmatprep.subr.bf16.mxu0 %v2565_v6  ;;  %1955 = vmatpush3.bf16.msra.mxu1 %v2680_v26 }
 0x4b6   : > { %1956 = vmatprep.subr.bf16.mxu1 %v2910_v49 }
 0x4b8   : > { %1930 = vmatpush1.bf16.msra.mxu0 %v2580_v15 }
 0x4b9   : > { %1932 = vmatprep.subr.bf16.mxu0 %v2583_v17  ;;  %1958 = vmatpush3.bf16.msra.mxu1 %v2690_v37 }
 0x4ba   : > { %1959 = vmatprep.subr.bf16.mxu1 %v2910_v49 }
 0x4bc   : > { %1934 = vmatpush1.bf16.msra.mxu0 %v2598_v30 }
 0x4bd   : > { %1936 = vmatprep.subr.bf16.mxu0 %v2601_v32  ;;  %1961 = vmatpush3.bf16.msra.mxu1 %v2700_v50 }
 0x4be   : > { %1962 = vmatprep.subr.bf16.mxu1 %v2910_v49 }
 0x4c0   : > { %1938 = vmatpush1.bf16.msra.mxu0 %v2616_v40 }
 0x4c1   : > { %1940 = vmatprep.subr.bf16.mxu0 %v2619_v41  ;;  %1964 = vmatpush3.bf16.msra.mxu1 %v2710_v61 }
 0x4c2   : > { %1965 = vmatprep.subr.bf16.mxu1 %v2910_v49 }
 0x4c4   : > { %1942 = vmatpush1.bf16.msra.mxu0 %v2634_v55 }
 0x4c5   : > { %1944 = vmatprep.subr.bf16.mxu0 %v2637_v56  ;;  %1967 = vmatpush3.bf16.msra.mxu1 %v2719_v7 }
 0x4c6   : > { %1968 = vmatprep.subr.bf16.mxu1 %v2910_v49 }
 0x4c8   : > { %1946 = vmatpush1.bf16.msra.mxu0 %v2911_v16 }
 0x4c9   : > { %1970 = vmatpush3.bf16.msra.mxu1 %v2912_v19 }
 0x4cb   : > { %1295 = vmatmul.mubr.f32.vlgmr.msra.gmra.mrb[4].mxu0 %v2772_v39 }
 0x59e   : > { %v1296_v22 = vpop.f32.mrb[4].mxu0 }
 0x59f   : > { %v1298_v25 = vpop.f32.mrb[5].mxu0  ;;  %v1978_v57 = vadd.f32 %v2761_v48, %v1296_v22 }
 0x5a0   : > { %v1980_v28 = vadd.f32 %v2740_v62, %v1298_v25 }
 0x5a1   : > { %v1506_v58 = vmul.f32 -1.442695, %v1978_v57 }
 0x5a2   : > { %v1507_v31 = vmul.f32 -1.442695, %v1980_v28 }
 0x5a4   : > { %2047 = vpow2.f32 %v1507_v31 }
 0x5ae   : > { %v2048_v45 = vpop.eup %2047 }
 0x5af   : > { %v1312_v46 = vadd.f32 1.0, %v2048_v45 }
 0x5b1   : > { %2049 = vrcp.f32 %v1312_v46 }
 0x5b2   : > { %2051 = vpow2.f32 %v1506_v58 }
 0x5bb   : > { %v2050_v42 = vpop.eup %2049 }
 0x5bc   : > { %v1315_v43 = vmul.f32 %v2050_v42, %v2772_v39  ;;  %v2052_v5 = vpop.eup %2051 }
 0x5bd   : > { %v1305_v6 = vadd.f32 1.0, %v2052_v5 }
 0x5be   : > { %1742 = vmatmul.mubr.f32.vlgmr.msra.gmra.mrb[6].mxu1 %v1315_v43 }
 0x5bf   : > { %2053 = vrcp.f32 %v1305_v6 }
 0x5c9   : > { %v2054_v40 = vpop.eup %2053 }
 0x5ca   : > { %v1390_v41 = vsub.f32 1.0, %v2054_v40 }
 0x5cc   : > { %v1391_v63 = vmul.f32 %v1390_v41, %v2772_v39 }
 0x691   : > { %v1382_v15 = vpop.f32.mrb[6].mxu1 }
 0x692   : > { %v1982_v17 = vadd.f32 %v2767_v11, %v1382_v15  ;;  %v1743_v30 = vpop.f32.mrb[7].mxu1 }
 0x694   : > { %v1387_v32 = vmul.f32 %v1982_v17, %v2350_v38 }
 0x696   : > { %2055 = vtanh.f32 %v1387_v32 }
 0x6a0   : > { %v2056_v55 = vpop.eup %2055 }
 0x6a1   : > { %v1389_v56 = vmul.f32 %v2056_v55, %v2054_v40 }
 0x6a3   : > { %v1392_v8 = vadd.f32 %v1391_v63, %v1389_v56 }
 0x6a5   : > { %1393 = vst [vmem:[%s403_s15] sm:$0xff] %v1392_v8 }
 0x6a6   : > { %2070 = shalt.err (!%p2067_p3)
}
 0x6a7   : > { %s2071_s24 = scalar_lea.hbm %s2841_s13, 128  ;;  %s2075_s15 = scalar_lea.hbm %s2894_s11, 256 }
 0x6a8   : > { %p2072_p4 = scmp.ne.s32.totalorder %s2841_s13, %s2071_s24  ;;  %p2076_p9 = scmp.lt.u32.totalorder %s2841_s13, %s2894_s11 }
 0x6a9   : > { %p2077_p10 = scmp.lt.u32.totalorder %s2075_s15, %s2071_s24  ;;  %p2079_p12 = scmp.lt.u32.totalorder %s2071_s24, %s2841_s13 }
 0x6aa   : > { %p2073_p7 = pnand %p2072_p4, %p2224_p5 }
 0x6ab   : > { %p2078_p11 = por %p2077_p10, %p2076_p9 }
 0x6ac   : > { %p2074_p8 = pneg %p2073_p7 }
 0x6ad   : > { %p2080_p13 = por %p2079_p12, %p2078_p11 }
 0x6af   : > { %p2081_p0 = pnand %p2080_p13, %p2074_p8 }
 0x6b1   : > { %2084 = shalt.err (!%p2081_p0)
}
 0x6b2   : > { %1991 = dma.vmem_to_hbm [thread:$0]  (%p2224_p5), %s2843_s3, 128, %s2841_s13, %s1395_s30  }
 0x6b3 PF: > { %p1997_p1 = scmp.ge.s32.totalorder %s2119_s20, 2  ;;  %s1420_s14 = sand.u32 1, %s2107_s17  }
 0x6b4   : > { %s1421_s21 = scalar_lea.sflag [#allocation3], %s1420_s14 }
 0x6b5   : > { %p1994_p2 = pnand %p1997_p1, %p2228_p6 }
 0x6b7   : > { %2102 = dma.done.wait (!%p1994_p2), %s1421_s21, 128  }
 0x6b8   : > { %2104 = vsyncadd (!%p1994_p2), %s1421_s21, 4294967168  ;;  %p21_p3 = scmp.ge.s32.totalorder %s2211_s23, 4   ;;  %s2913_s17 = smov %s2111_s18 }
 0x6b9   : > { %s2914_s18 = smov %s2115_s19  ;;  %s2915_s19 = smov %s2222_s26 }
 0x6ba   : > { %s2916_s20 = smov %s2211_s23  ;;  %23 = sbr.rel (!%p21_p3) target bundleno = 6 (0x6), region = 105 }
 0x6c1   :  { %1426 = vsyncpa [#allocation3], 1 }
 0x6c2   :  { %1428 = vsyncpa [#allocation3 + $0x1], 1 }

</bundles_post_ra>
